<compile_context>
chip_gen: v7x
topology: tpu7x:2x2x1
jax: 0.10.0
libtpu: 0.0.40
codegen_flags: <defaults>
</compile_context>

<pallas_src>
import math

import jax
import jax.numpy as jnp
from jax.experimental import pallas as pl
from jax.experimental.pallas import tpu as pltpu


def _pe_kernel(coef_ref, o_ref):
    # coef_ref: (2, lanes) f32
    #   row 0: step  = k / div_term per lane          (angle increment per packed row)
    #   row 1: bias  = lane_pos / div_term + phase    (intra-row position + sin/cos phase)
    rows, lanes = o_ref.shape
    step = coef_ref[0:1, :]                                   # (1, lanes)
    # Fold this tile's row offset into a per-tile lane constant (computed once
    # per grid step, not per vreg).
    row_base = (pl.program_id(0) * rows).astype(jnp.float32)
    base = row_base * step + coef_ref[1:2, :]                 # (1, lanes)
    # TODO(synk): Mosaic iota is int32-only, so one int->f32 convert per vreg
    # remains; the int add was removed by folding row_base into `base`.
    r = jax.lax.broadcasted_iota(jnp.int32, (rows, lanes), 0).astype(jnp.float32)
    o_ref[...] = jnp.sin(r * step + base).astype(o_ref.dtype)


def _round_up(x: int, m: int) -> int:
    return ((x + m - 1) // m) * m


def _seq_tile(out_rows: int, lanes: int, itemsize: int) -> int:
    # ~6 MiB per output buffer; double-buffered ~12 MiB fits v5e's 16 MiB
    # scoped-VMEM default and v6e/v7x's 32 MiB defaults (v7x has 64 MiB
    # physical) without raising vmem_limit_bytes. Always a multiple of 8 rows.
    budget_rows = max(8, (6 * 1024 * 1024) // max(lanes * itemsize, 1))
    tile = max(8, min(out_rows, (budget_rows // 8) * 8))
    # Guarantee >= 2 grid steps whenever the table can be split, so the
    # "parallel" seq axis actually shards across both v7x TensorCores and HBM
    # writeback overlaps compute on every chip.
    if out_rows > 8 and tile >= out_rows:
        tile = max(8, _round_up((out_rows + 1) // 2, 8))
    return tile


def positional_encoding_forward(x, d_model: int, max_len: int = 5000,
                                dtype=jnp.float32):
    """Equivalent of PositionalEncoding(d_model, max_len)(x).

    x: (batch_size, seq_len) -- only its (static) seq_len is used.
    returns: (seq_len, d_model) encoding table slice (default float32).
    """
    assert d_model % 2 == 0, f"{d_model} must be even!"
    _, seq_len = x.shape
    assert seq_len <= max_len

    half = d_model // 2
    # Exactly the reference frequencies (the module divides by div_term).
    div_term = jnp.exp(
        jnp.arange(0, d_model, 2, dtype=jnp.float32)
        * -(math.log(10000.0) / d_model))                       # (half,)
    inv_div = jnp.repeat(1.0 / div_term, 2)                     # (d_model,)
    phase = jnp.tile(jnp.array([0.0, math.pi / 2.0], jnp.float32), half)

    # Lane-dense packing: k consecutive positions per 128-lane output row.
    # (128 % d_model == 0 => k is a power of two, so k/div_term is exact.)
    if d_model < 128 and 128 % d_model == 0:
        k = 128 // d_model
    else:
        k = 1
    lanes = k * d_model
    inv_t = jnp.tile(inv_div, k)                                # (lanes,)
    phase_t = jnp.tile(phase, k)                                # (lanes,)
    lane_pos = jnp.repeat(jnp.arange(k, dtype=jnp.float32), d_model)
    coef = jnp.stack([k * inv_t,
                      lane_pos * inv_t + phase_t]).astype(jnp.float32)  # (2, lanes)

    n_packed = pl.cdiv(seq_len, k)
    out_rows = _round_up(n_packed, 8)          # pad rows; trimmed after reshape
    itemsize = jnp.dtype(dtype).itemsize
    tile = _seq_tile(out_rows, lanes, itemsize)
    grid = (pl.cdiv(out_rows, tile),)

    packed = pl.pallas_call(
        _pe_kernel,
        out_shape=jax.ShapeDtypeStruct((out_rows, lanes), dtype),
        grid=grid,
        in_specs=[pl.BlockSpec((2, lanes), lambda i: (0, 0))],
        out_specs=pl.BlockSpec((tile, lanes), lambda i: (i, 0)),
        compiler_params=pltpu.CompilerParams(
            dimension_semantics=("parallel",)),
    )(coef)

    # (out_rows, k*d_model) -> (out_rows*k, d_model) is a free row-major view.
    return packed.reshape(out_rows * k, d_model)[:seq_len]


def _reference(seq_len: int, d_model: int):
    # Direct jnp transcription of the PyTorch module.
    pos = jnp.arange(seq_len, dtype=jnp.float32)[:, None]
    div_term = jnp.exp(
        jnp.arange(0, d_model, 2, dtype=jnp.float32)
        * -(math.log(10000.0) / d_model))
    enc = jnp.zeros((seq_len, d_model), jnp.float32)
    enc = enc.at[:, 0::2].set(jnp.sin(pos / div_term))
    enc = enc.at[:, 1::2].set(jnp.cos(pos / div_term))
    return enc


def _check(seq_len: int, d_model: int, out):
    ref = _reference(seq_len, d_model)
    # The module's formula divides by div_term, so high channels reach angles
    # of ~1e4+ rad where one f32 ulp of the argument is ~1e-3 rad; any two
    # valid f32 implementations of sin/cos there legitimately differ by
    # O(ulp(angle)). Use a per-column tolerance scaled by the max angle.
    div_term = jnp.exp(
        jnp.arange(0, d_model, 2, dtype=jnp.float32)
        * -(math.log(10000.0) / d_model))
    max_angle = jnp.repeat((seq_len - 1) / div_term, 2)         # (d_model,)
    tol = 1e-4 + 32.0 * jnp.finfo(jnp.float32).eps * max_angle
    col_err = jnp.max(jnp.abs(out - ref), axis=0)
    assert bool(jnp.all(col_err <= tol)), (col_err, tol)


if __name__ == "__main__":
    key = jax.random.PRNGKey(0)
    batch, seq_len, d_model = 2, 8, 32

    # x content is irrelevant (only its shape matters), as in the PyTorch module.
    x = jax.random.normal(key, (batch, seq_len), dtype=jnp.float32)

    out = positional_encoding_forward(x, d_model=d_model, max_len=5000)
    out = jax.block_until_ready(out)
    assert out.shape == (seq_len, d_model)
    assert out.dtype == jnp.float32
    _check(seq_len, d_model, out)

    # Uneven seq_len: exercises the packed-row padding / trailing-slice path.
    seq_len2 = 13
    x2 = jax.random.normal(key, (batch, seq_len2), dtype=jnp.float32)
    out2 = jax.block_until_ready(
        positional_encoding_forward(x2, d_model=d_model, max_len=5000))
    assert out2.shape == (seq_len2, d_model)
    _check(seq_len2, d_model, out2)

    print("KERNEL_OK")
</pallas_src>

<mosaic_0001>
module attributes {stable_mosaic.version = 11 : i64} {
  func.func @_pe_kernel(%arg0: i32, %arg1: memref<2x128xf32, #tpu.memory_space<vmem>>, %arg2: memref<8x128xf32, #tpu.memory_space<vmem>>) attributes {dimension_semantics = [#tpu.dimension_semantics<parallel>], iteration_bounds = array<i64: 1>, scalar_prefetch = 0 : i64, scratch_operands = 0 : i64, tpu.core_type = #tpu.core_type<tc>, window_params = [{pipeline_mode = #tpu.pipeline_mode<synchronous>, transform_indices = @transform_0, window_bounds = array<i64: 2, 128>}, {transform_indices = @transform_1, window_bounds = array<i64: 8, 128>}]} {
    %c0 = arith.constant 0 : index
    %c0_0 = arith.constant 0 : index
    %0 = vector.load %arg1[%c0, %c0_0] : memref<2x128xf32, #tpu.memory_space<vmem>>, vector<1x128xf32>
    %c8_i32 = arith.constant 8 : i32
    %1 = arith.muli %arg0, %c8_i32 : i32
    %2 = arith.sitofp %1 : i32 to f32
    %3 = vector.broadcast %2 : f32 to vector<1x128xf32>
    %4 = arith.mulf %3, %0 : vector<1x128xf32>
    %c1 = arith.constant 1 : index
    %c0_1 = arith.constant 0 : index
    %5 = vector.load %arg1[%c1, %c0_1] : memref<2x128xf32, #tpu.memory_space<vmem>>, vector<1x128xf32>
    %6 = arith.addf %4, %5 : vector<1x128xf32>
    %7 = tpu.iota {dimensions = array<i32: 0>} : vector<8x128xi32>
    %8 = arith.sitofp %7 : vector<8x128xi32> to vector<8x128xf32>
    %9 = vector.broadcast %0 : vector<1x128xf32> to vector<8x128xf32>
    %10 = arith.mulf %8, %9 : vector<8x128xf32>
    %11 = vector.broadcast %6 : vector<1x128xf32> to vector<8x128xf32>
    %12 = arith.addf %10, %11 : vector<8x128xf32>
    %13 = math.sin %12 : vector<8x128xf32>
    %c0_2 = arith.constant 0 : index
    %c0_3 = arith.constant 0 : index
    %14 = vector.load %arg2[%c0_2, %c0_3] : memref<8x128xf32, #tpu.memory_space<vmem>>, vector<8x128xf32>
    tpu.vector_store %arg2[%c0_2, %c0_3], %13 {strides = array<i32>} : memref<8x128xf32, #tpu.memory_space<vmem>>, vector<8x128xf32>,
    return
  }
  func.func @transform_0(%arg0: i32) -> (i32, i32) {
    %c0_i32 = arith.constant 0 : i32
    %c0_i32_0 = arith.constant 0 : i32
    %c0_i32_1 = arith.constant 0 : i32
    return %c0_i32, %c0_i32_0 : i32, i32
  }
  func.func @transform_1(%arg0: i32) -> (i32, i32) {
    %c0_i32 = arith.constant 0 : i32
    %c0_i32_0 = arith.constant 0 : i32
    return %arg0, %c0_i32 : i32, i32
  }
}

</mosaic_0001>

<bundles_post_ra>
// kernel: tpu_custom_call.1
= control target key start
LH: loop header
LB: loop body
LE: loop exit
PB: predicated region body
PF: predicated region fallthrough
CT: control target
= control target key end

     0   :  { %6 = vsyncpa [#allocation3], 0  ;;  %s292_s0 = inlined_call_operand.hbm [shape: f32[2,128], index: 0, kind: input, shape index: {}]   ;;  %s293_s1 = inlined_call_operand.hbm [shape: f32[8,128], index: 1, kind: output, shape index: {}]  }
   0x1   :  { %7 = vsyncpa [#allocation4], 0  ;;  %s229_s6 = smov [#allocation2]   ;;  %s181_s10 = scalar_lea.hbm %s292_s0, 32 }
   0x2   :  { %s14_s7 = sshll.u32 %s229_s6, 4  ;;  %p182_p0 = scmp.ne.s32.totalorder %s292_s0, %s181_s10  ;;  %s15_s7 = int_to_ptr.vmem [resolvable:$true] %s14_s7 }
   0x3   :  { %p185_p1 = scmp.lt.u32.totalorder %s181_s10, %s292_s0 }
   0x5   :  { %p187_p2 = pnand %p185_p1, %p182_p0 }
   0x7   :  { %190 = shalt.err (!%p187_p2)
}
   0x8   :  { %s191_s15 = scalar_lea.vmem %s15_s7, 32  ;;  %p196_p4 = scmp.lt.s32.totalorder %s15_s7, %s15_s7 }
   0x9   :  { %p192_p3 = scmp.ne.s32.totalorder %s15_s7, %s191_s15  ;;  %p197_p5 = scmp.lt.s32.totalorder %s191_s15, %s191_s15 }
   0xb   :  { %p198_p6 = por %p197_p5, %p196_p4 }
   0xd   :  { %p199_p7 = pnand %p198_p6, %p192_p3 }
   0xf   :  { %202 = shalt.err (!%p199_p7)
}
  0x10   :  { %17 = dma.hbm_to_vmem [thread:$0]  %s292_s0, 32, %s15_s7, [#allocation3]  }
  0x11   :  { %225 = dma.done.wait [#allocation3], 32  }
  0x12   :  { %226 = vsyncadd [#allocation3], 4294967264  ;;  %v28_v0 = vlaneseq  ;;  %v21_v4 = vld [vmem:[#allocation2] sm:$0x1]  ;;  %v26_v5 = vld [vmem:[#allocation2 + $0x1] sm:$0x1] }
  0x13   :  { %v25_v6 = vmul.f32 0.0, %v21_v4  ;;  %v230_v23 = vmov 683565275   ;;  %v231_v25 = vmov 2475754826   ;;  %s236_s0 = smov [#allocation5]  }
  0x14   :  { %v29_v1 = vshrl.u32 %v28_v0, 7  ;;  %v232_v27 = vmov 2131351028   ;;  %v233_v29 = vmov 2102212464   ;;  %s152_s18 = sshll.u32 %s236_s0, 4  ;;  %s153_s18 = int_to_ptr.vmem [resolvable:$true] %s152_s18 }
  0x15   :  { %v27_v8 = vadd.f32 %v26_v5, %v25_v6  ;;  %v234_v31 = vmov 920167782   ;;  %v235_v38 = vmov 1326507024   ;;  %s203_s19 = scalar_lea.vmem %s153_s18, 128  ;;  %p208_p9 = scmp.lt.s32.totalorder %s153_s18, %s153_s18 }
  0x16   :  { %v33_v2 = vsub.s32 0, %v29_v1  ;;  %v30_v3 = vcvt.s32.f32 %v29_v1  ;;  %p204_p8 = scmp.ne.s32.totalorder %s153_s18, %s203_s19  ;;  %p209_p10 = scmp.lt.s32.totalorder %s203_s19, %s203_s19 }
  0x18   :  { %v34_v7 = vrot.slane %v21_v4, %v33_v2  ;;  %v39_v10 = vrot.slane %v27_v8, %v33_v2  ;;  %p210_p11 = por %p209_p10, %p208_p9 }
  0x1a   :  { %v35_v9 = vmul.f32 %v34_v7, %v30_v3  ;;  %p211_p12 = pnand %p210_p11, %p204_p8 }
  0x1c   :  { %v259_v11 = vadd.f32 %v39_v10, %v35_v9 }
  0x1e   :  { %v44_v12 = vand.u32 2139095040, %v259_v11  ;;  %v41_v14 = vand.u32 2147483647, %v259_v11  ;;  %vm43_vm7 = vcmp.lt.s32.totalorder %v259_v11, 0  ;;  %vm133_vm12 = vweird.f32 %v259_v11 }
  0x20   :  { %v45_v13 = vshrl.u32 %v44_v12, 23  ;;  %v48_v17 = vand.u32 8388607, %v41_v14  ;;  %vm42_vm8 = vcmp.le.f32.partialorder %v41_v14, 0.7853982 }
  0x22   :  { %v161_v15 = vadd.s32 4294967169, %v45_v13  ;;  %v49_v20 = vor.u32 8388608, %v48_v17 }
  0x24   :  { %v51_v16 = vadd.s32 1, %v161_v15  ;;  %v89_v40 = vshll.u32 %v49_v20, 8 }
  0x26   :  { %vm52_vm0 = vcmp.gt.s32.totalorder %v51_v16, 0 }
  0x27   :  { %v53_v18 = vsel %vm52_vm0, %v51_v16, 0 }
  0x28   :  { %v55_v19 = vand.u32 31, %v53_v18  ;;  %v54_v21 = vshrl.u32 %v53_v18, 5 }
  0x2a   :  { %v56_v22 = vsub.s32 32, %v55_v19  ;;  %v58_v24 = vshll.u32 %v230_v23, %v55_v19  ;;  %v61_v26 = vshll.u32 %v231_v25, %v55_v19  ;;  %v64_v28 = vshll.u32 %v232_v27, %v55_v19 }
  0x2b   :  { %v67_v30 = vshll.u32 %v233_v29, %v55_v19  ;;  %v70_v32 = vshll.u32 %v234_v31, %v55_v19  ;;  %vm73_vm1 = vcmp.lt.s32.totalorder %v54_v21, 1  ;;  %vm76_vm2 = vcmp.lt.s32.totalorder %v54_v21, 4 }
  0x2c   :  { %v57_v33 = vshrl.u32 %v230_v23, %v56_v22  ;;  %v59_v34 = vshrl.u32 %v231_v25, %v56_v22  ;;  %v62_v35 = vshrl.u32 %v232_v27, %v56_v22  ;;  %v65_v36 = vshrl.u32 %v233_v29, %v56_v22 }
  0x2d   :  { %v68_v37 = vshrl.u32 %v234_v31, %v56_v22  ;;  %v71_v39 = vshrl.u32 %v235_v38, %v56_v22  ;;  %vm74_vm3 = vcmp.lt.s32.totalorder %v54_v21, 2  ;;  %vm75_vm4 = vcmp.lt.s32.totalorder %v54_v21, 3 }
  0x2e   :  { %v60_v41 = vor.u32 %v59_v34, %v58_v24  ;;  %v63_v42 = vor.u32 %v62_v35, %v61_v26  ;;  %v66_v43 = vor.u32 %v65_v36, %v64_v28 }
  0x2f   :  { %v69_v44 = vor.u32 %v68_v37, %v67_v30  ;;  %v72_v45 = vor.u32 %v71_v39, %v70_v32 }
  0x30   :  { %v77_v46 = vsel %vm73_vm1, %v57_v33, %v60_v41  ;;  %v78_v47 = vsel %vm76_vm2, %v66_v43, 2102212464  ;;  %v81_v48 = vsel %vm73_vm1, %v60_v41, %v63_v42  ;;  %v85_v49 = vsel %vm73_vm1, %v63_v42, %v66_v43 }
  0x31   :  { %v79_v50 = vsel %vm75_vm4, %v63_v42, %v78_v47  ;;  %v82_v51 = vsel %vm76_vm2, %v69_v44, 920167782  ;;  %v86_v52 = vsel %vm76_vm2, %v72_v45, 1326507024 }
  0x32   :  { %v83_v53 = vsel %vm75_vm4, %v66_v43, %v82_v51  ;;  %v87_v54 = vsel %vm75_vm4, %v69_v44, %v86_v52  ;;  %v80_v55 = vsel %vm74_vm3, %v77_v46, %v79_v50 }
  0x33   :  { %v84_v56 = vsel %vm74_vm3, %v81_v48, %v83_v53  ;;  %v88_v57 = vsel %vm74_vm3, %v85_v49, %v87_v54  ;;  %v96_v62 = vmul.u32 %v89_v40, %v80_v55 }
  0x34   :  { %v265_v58 = vmul.u32.u64.low %v89_v40, %v88_v57  ;;  %v266_v59 = vmul.u32.u64.high %v89_v40, %v88_v57, %v265_v58  ;;  %v268_v60 = vmul.u32.u64.low %v89_v40, %v84_v56  ;;  %v269_v61 = vmul.u32.u64.high %v89_v40, %v84_v56, %v268_v60 }
  0x36   :  { %vm98_vm5 = vc.u32 %v266_v59, %v268_v60  ;;  %v99_v63 = vadd.s32 1, %v269_v61  ;;  %v97_v10 = vadd.s32 %v268_v60, %v266_v59 }
  0x38   :  { %v100_v0 = vsel %vm98_vm5, %v99_v63, %v269_v61 }
  0x39   :  { %v101_v1 = vadd.s32 %v100_v0, %v96_v62 }
  0x3b   :  { %v102_v2 = vadd.s32 536870912, %v101_v1 }
  0x3d   :  { %v103_v3 = vshrl.u32 %v102_v2, 30 }
  0x3f   :  { %v104_v4 = vshll.u32 %v103_v3, 30  ;;  %v127_v24 = vsub.s32 4, %v103_v3 }
  0x41   :  { %v105_v5 = vsub.s32 %v101_v1, %v104_v4  ;;  %v128_v27 = vsel %vm43_vm7, %v127_v24, %v103_v3 }
  0x42   :  { %v130_v30 = vsel %vm42_vm8, 0, %v128_v27 }
  0x43   :  { %v107_v6 = vsub.s32 0, %v105_v5  ;;  %v134_v31 = vadd.s32 3, %v130_v30 }
  0x45   :  { %v162_v7 = vmin.u32 %v107_v6, %v105_v5  ;;  %v135_v32 = vand.u32 3, %v134_v31 }
  0x47   :  { %v109_v8 = vclz %v162_v7  ;;  %vm140_vm9 = vcmp.eq.s32.totalorder %v135_v32, 2  ;;  %vm137_vm10 = vcmp.eq.s32.totalorder %v135_v32, 0  ;;  %vm136_vm11 = vcmp.lt.s32.totalorder %v135_v32, 2 }
  0x49   :  { %v163_v9 = vadd.s32 4294967294, %v109_v8 }
  0x4b   :  { %vm164_vm6 = vcmp.lt.s32.totalorder %v163_v9, 0 }
  0x4c   :  { %v112_v12 = vsel %vm164_vm6, 0, %v163_v9 }
  0x4d   :  { %v113_v13 = vsub.s32 32, %v112_v12  ;;  %v114_v15 = vshll.u32 %v105_v5, %v112_v12  ;;  %v117_v16 = vsub.s32 4294967266, %v112_v12 }
  0x4f   :  { %v115_v17 = vshrl.u32 %v97_v10, %v113_v13  ;;  %v118_v18 = vadd.s32 127, %v117_v16 }
  0x51   :  { %v116_v19 = vor.u32 %v115_v17, %v114_v15  ;;  %v119_v20 = vshll.u32 %v118_v18, 23 }
  0x53   :  { %v120_v21 = vor.u32 4788187, %v119_v20  ;;  %v123_v22 = vcvt.s32.f32 %v116_v19 }
  0x55   :  { %v121_v23 = vand.u32 2147483647, %v120_v21 }
  0x57   :  { %v124_v25 = vmul.f32 %v123_v22, %v121_v23 }
  0x59   :  { %v125_v26 = vxor.u32 2147483648, %v124_v25 }
  0x5b   :  { %v126_v28 = vsel %vm43_vm7, %v125_v26, %v124_v25 }
  0x5c   :  { %v129_v29 = vsel %vm42_vm8, %v259_v11, %v126_v28 }
  0x5d   :  { %177 = vcosq.f32 %v129_v29 }
  0x5e   :  { %179 = vsinq.f32 %v129_v29 }
  0x67   :  { %v178_v33 = vpop.eup %177 }
  0x68   :  { %v180_v34 = vpop.eup %179  ;;  %v141_v35 = vxor.u32 2147483648, %v178_v33 }
  0x69   :  { %v138_v36 = vxor.u32 2147483648, %v180_v34 }
  0x6a   :  { %v142_v14 = vsel %vm140_vm9, %v141_v35, %v180_v34 }
  0x6b   :  { %v139_v37 = vsel %vm137_vm10, %v178_v33, %v138_v36 }
  0x6c   :  { %v143_v38 = vsel %vm136_vm11, %v139_v37, %v142_v14 }
  0x6d   :  { %v144_v39 = vsel %vm133_vm12, nan, %v143_v38 }
  0x6e   :  { %145 = vst [vmem:[#allocation5] sm:$0xff] %v144_v39 }
  0x6f   :  { %214 = shalt.err (!%p211_p12)
}
  0x70   :  { %s215_s22 = scalar_lea.hbm %s293_s1, 128 }
  0x71   :  { %p216_p13 = scmp.ne.s32.totalorder %s293_s1, %s215_s22  ;;  %p219_p0 = scmp.lt.u32.totalorder %s215_s22, %s293_s1 }
  0x73   :  { %p221_p1 = pnand %p219_p0, %p216_p13 }
  0x75   :  { %224 = shalt.err (!%p221_p1)
}
  0x76   :  { %155 = dma.vmem_to_hbm [thread:$0]  %s153_s18, 128, %s293_s1, [#allocation4]  }
  0x77   :  { %227 = dma.done.wait [#allocation4], 128  }
  0x78   :  { %228 = vsyncadd [#allocation4], 4294967168 }
  0x79   :  { %159 = vsyncpa [#allocation3], 1 }
  0x7a   :  { %160 = vsyncpa [#allocation4], 1 }

</bundles_post_ra>
